<compile_context>
chip_gen: v6e
topology: v6e:2x2x1
jax: 0.10.0
libtpu: 0.0.40
codegen_flags: <defaults>
</compile_context>

<pallas_src>
import functools

import jax
import jax.numpy as jnp
from jax.experimental import pallas as pl
from jax.experimental.pallas import tpu as pltpu


def _round_up(v, m):
    return (v + m - 1) // m * m


# ----------------------------------------------------------------------------
# Kernel 1: R = sum_{i=1}^{2^k} (W^T)^i   via doubling (one-off, d x d)
# ----------------------------------------------------------------------------
def _series_kernel(num_doublings, wp_ref, wn_ref, r_ref):
    # A = W^T = (W_pos - W_neg)^T, built ONCE per forward (not per row tile).
    a = (wp_ref[...].astype(jnp.float32) - wn_ref[...].astype(jnp.float32)).T

    # Invariant: s = sum_{i=1}^{m} A^i, ap = A^m; each step doubles m.
    s = a
    ap = a
    for step in range(num_doublings):
        s = s + jnp.dot(ap, s, preferred_element_type=jnp.float32)
        if step + 1 < num_doublings:
            ap = jnp.dot(ap, ap, preferred_element_type=jnp.float32)

    r_ref[...] = s.astype(r_ref.dtype)


def notears_series_matrix(weight_pos, weight_neg, *, num_doublings=5):
    d = weight_pos.shape[0]
    # No grid: whole (d, d) operands live in VMEM; output stored as bf16 so the
    # per-tile matmul in kernel 2 gets single-pass MXU operands.
    return pl.pallas_call(
        functools.partial(_series_kernel, num_doublings),
        out_shape=jax.ShapeDtypeStruct((d, d), jnp.bfloat16),
    )(weight_pos, weight_neg)


# ----------------------------------------------------------------------------
# Kernel 2: recon = x + x @ R     (one bf16 MXU matmul per row tile)
# ----------------------------------------------------------------------------
def _recon_kernel(x_ref, r_ref, o_ref):
    x = x_ref[...].astype(jnp.float32)
    # bf16 operands, f32 accumulation on the MXU.  R excludes the identity, so
    # bf16 rounding only perturbs the small (~1e-3) series correction.
    xr = jnp.dot(x.astype(jnp.bfloat16), r_ref[...],
                 preferred_element_type=jnp.float32)
    o_ref[...] = (x + xr).astype(o_ref.dtype)


def notears_forward_series(x, weight_pos, weight_neg, *, num_doublings=5,
                           block_m=256):
    """Notears forward via a truncated Neumann series (requires ||W^T||_inf < 1)."""
    n, d = x.shape
    r = notears_series_matrix(weight_pos, weight_neg,
                              num_doublings=num_doublings)

    # cdiv + zero-padding instead of collapsing to one giant block for
    # non-divisible N (keeps double-buffering and megacore sharding).
    tm = min(block_m, _round_up(n, 8))
    n_pad = _round_up(n, tm)
    x_pad = x if n_pad == n else jnp.pad(x, ((0, n_pad - n), (0, 0)))

    cost = pl.CostEstimate(
        flops=int(2 * n_pad * d * d + n_pad * d),
        transcendentals=0,
        bytes_accessed=int(2 * n_pad * d * x.dtype.itemsize + 2 * d * d),
    )

    recon = pl.pallas_call(
        _recon_kernel,
        out_shape=jax.ShapeDtypeStruct((n_pad, d), x.dtype),
        grid=(n_pad // tm,),
        in_specs=[
            pl.BlockSpec((tm, d), lambda i: (i, 0)),   # x row tile
            pl.BlockSpec((d, d), lambda i: (0, 0)),    # series matrix (resident)
        ],
        out_specs=pl.BlockSpec((tm, d), lambda i: (i, 0)),
        compiler_params=pltpu.CompilerParams(
            dimension_semantics=("parallel",),          # shard row tiles across TCs
        ),
        cost_estimate=cost,
    )(x_pad, r)

    return recon if n_pad == n else recon[:n]


def notears_forward_exact(x, weight_pos, weight_neg):
    """Exact path for arbitrary trained weights (spectral radius may be >= 1)."""
    # x @ inv(I - W^T) == solve(I - W, x^T)^T  (no explicit inverse is formed).
    # TODO(synk): dense LU solve has no clean Pallas equivalent; plain JAX/XLA.
    w = weight_pos.astype(jnp.float32) - weight_neg.astype(jnp.float32)
    a = jnp.eye(w.shape[0], dtype=jnp.float32) - w
    return jnp.linalg.solve(a, x.astype(jnp.float32).T).T.astype(x.dtype)


def notears_forward(x, weight_pos, weight_neg, *, method="auto",
                    num_doublings=5, block_m=256, norm_bound=0.5):
    """Notears.forward(x).

    method: "series" (Pallas, requires ||W^T||_inf < 1), "exact" (LU solve),
            or "auto" (cheap norm check, then dispatch).
    """
    if method == "series":
        return notears_forward_series(x, weight_pos, weight_neg,
                                      num_doublings=num_doublings,
                                      block_m=block_m)
    if method == "exact":
        return notears_forward_exact(x, weight_pos, weight_neg)

    # "auto": the truncated series is only valid when ||W^T||_inf < 1; check it
    # cheaply (one reduction) and fall back to the exact solve otherwise.
    w = weight_pos - weight_neg
    norm = jnp.max(jnp.sum(jnp.abs(w), axis=0))      # = ||W^T||_inf
    return jax.lax.cond(
        norm < norm_bound,
        lambda: notears_forward_series(x, weight_pos, weight_neg,
                                       num_doublings=num_doublings,
                                       block_m=block_m),
        lambda: notears_forward_exact(x, weight_pos, weight_neg),
    )


if __name__ == "__main__":
    DIMS = 128   # self.dims
    N = 16       # batch / number of samples

    key = jax.random.PRNGKey(0)
    k1, k2, k3, k4 = jax.random.split(key, 4)

    # nn.Parameter(torch.rand(dims, dims) * 0.001) -> uniform[0,1) * 1e-3
    weight_pos = jax.random.uniform(k1, (DIMS, DIMS), dtype=jnp.float32) * 0.001
    weight_neg = jax.random.uniform(k2, (DIMS, DIMS), dtype=jnp.float32) * 0.001
    x = jax.random.normal(k3, (N, DIMS), dtype=jnp.float32)

    # Reference: exact semantics of the original PyTorch module.
    w = weight_pos - weight_neg
    w_inv = jnp.linalg.inv(jnp.eye(DIMS, dtype=jnp.float32) - w.T)
    ref = x @ w_inv

    # Pallas series path.
    recon = jax.block_until_ready(
        notears_forward(x, weight_pos, weight_neg, method="series"))
    assert recon.shape == (N, DIMS)
    assert jnp.allclose(recon, ref, atol=1e-4, rtol=1e-4)

    # Auto dispatch (norm check picks the series path at this init).
    recon_auto = jax.block_until_ready(
        notears_forward(x, weight_pos, weight_neg))
    assert jnp.allclose(recon_auto, ref, atol=1e-4, rtol=1e-4)

    # Exact fallback (transposed LU solve).
    recon_exact = jax.block_until_ready(
        notears_forward(x, weight_pos, weight_neg, method="exact"))
    assert jnp.allclose(recon_exact, ref, atol=1e-4, rtol=1e-4)

    # Non-divisible / multi-tile batch exercises the cdiv + padding path.
    x_big = jax.random.normal(k4, (300, DIMS), dtype=jnp.float32)
    ref_big = x_big @ w_inv
    recon_big = jax.block_until_ready(
        notears_forward(x_big, weight_pos, weight_neg, method="series",
                        block_m=128))
    assert recon_big.shape == (300, DIMS)
    assert jnp.allclose(recon_big, ref_big, atol=1e-4, rtol=1e-4)

    print("KERNEL_OK")
</pallas_src>

<mosaic_0001>
module attributes {stable_mosaic.version = 11 : i64} {
  func.func @_series_kernel(%arg0: memref<128x128xf32, #tpu.memory_space<vmem>>, %arg1: memref<128x128xf32, #tpu.memory_space<vmem>>, %arg2: memref<128x128xbf16, #tpu.memory_space<vmem>>) attributes {dimension_semantics = [], scalar_prefetch = 0 : i64, scratch_operands = 0 : i64, tpu.core_type = #tpu.core_type<tc>} {
    %c0 = arith.constant 0 : index
    %c0_0 = arith.constant 0 : index
    %0 = vector.load %arg0[%c0, %c0_0] : memref<128x128xf32, #tpu.memory_space<vmem>>, vector<128x128xf32>
    %c0_1 = arith.constant 0 : index
    %c0_2 = arith.constant 0 : index
    %1 = vector.load %arg1[%c0_1, %c0_2] : memref<128x128xf32, #tpu.memory_space<vmem>>, vector<128x128xf32>
    %2 = arith.subf %0, %1 : vector<128x128xf32>
    %3 = tpu.transpose %2, [1, 0] : vector<128x128xf32> -> vector<128x128xf32>
    %cst = arith.constant dense<0.000000e+00> : vector<128x128xf32>
    %4 = tpu.matmul %3, %3, %cst {dimension_numbers = #tpu.dot_dimension_numbers<[1], [0], [0], [1], [0, 0, 1, 1], [], []>} : vector<128x128xf32>, vector<128x128xf32>, vector<128x128xf32> -> vector<128x128xf32>
    %5 = arith.addf %3, %4 : vector<128x128xf32>
    %cst_3 = arith.constant dense<0.000000e+00> : vector<128x128xf32>
    %6 = tpu.matmul %3, %3, %cst_3 {dimension_numbers = #tpu.dot_dimension_numbers<[1], [0], [0], [1], [0, 0, 1, 1], [], []>} : vector<128x128xf32>, vector<128x128xf32>, vector<128x128xf32> -> vector<128x128xf32>
    %cst_4 = arith.constant dense<0.000000e+00> : vector<128x128xf32>
    %7 = tpu.matmul %6, %5, %cst_4 {dimension_numbers = #tpu.dot_dimension_numbers<[1], [0], [0], [1], [0, 0, 1, 1], [], []>} : vector<128x128xf32>, vector<128x128xf32>, vector<128x128xf32> -> vector<128x128xf32>
    %8 = arith.addf %5, %7 : vector<128x128xf32>
    %cst_5 = arith.constant dense<0.000000e+00> : vector<128x128xf32>
    %9 = tpu.matmul %6, %6, %cst_5 {dimension_numbers = #tpu.dot_dimension_numbers<[1], [0], [0], [1], [0, 0, 1, 1], [], []>} : vector<128x128xf32>, vector<128x128xf32>, vector<128x128xf32> -> vector<128x128xf32>
    %cst_6 = arith.constant dense<0.000000e+00> : vector<128x128xf32>
    %10 = tpu.matmul %9, %8, %cst_6 {dimension_numbers = #tpu.dot_dimension_numbers<[1], [0], [0], [1], [0, 0, 1, 1], [], []>} : vector<128x128xf32>, vector<128x128xf32>, vector<128x128xf32> -> vector<128x128xf32>
    %11 = arith.addf %8, %10 : vector<128x128xf32>
    %cst_7 = arith.constant dense<0.000000e+00> : vector<128x128xf32>
    %12 = tpu.matmul %9, %9, %cst_7 {dimension_numbers = #tpu.dot_dimension_numbers<[1], [0], [0], [1], [0, 0, 1, 1], [], []>} : vector<128x128xf32>, vector<128x128xf32>, vector<128x128xf32> -> vector<128x128xf32>
    %cst_8 = arith.constant dense<0.000000e+00> : vector<128x128xf32>
    %13 = tpu.matmul %12, %11, %cst_8 {dimension_numbers = #tpu.dot_dimension_numbers<[1], [0], [0], [1], [0, 0, 1, 1], [], []>} : vector<128x128xf32>, vector<128x128xf32>, vector<128x128xf32> -> vector<128x128xf32>
    %14 = arith.addf %11, %13 : vector<128x128xf32>
    %cst_9 = arith.constant dense<0.000000e+00> : vector<128x128xf32>
    %15 = tpu.matmul %12, %12, %cst_9 {dimension_numbers = #tpu.dot_dimension_numbers<[1], [0], [0], [1], [0, 0, 1, 1], [], []>} : vector<128x128xf32>, vector<128x128xf32>, vector<128x128xf32> -> vector<128x128xf32>
    %cst_10 = arith.constant dense<0.000000e+00> : vector<128x128xf32>
    %16 = tpu.matmul %15, %14, %cst_10 {dimension_numbers = #tpu.dot_dimension_numbers<[1], [0], [0], [1], [0, 0, 1, 1], [], []>} : vector<128x128xf32>, vector<128x128xf32>, vector<128x128xf32> -> vector<128x128xf32>
    %17 = arith.addf %14, %16 : vector<128x128xf32>
    %18 = arith.truncf %17 : vector<128x128xf32> to vector<128x128xbf16>
    %c0_11 = arith.constant 0 : index
    %c0_12 = arith.constant 0 : index
    %19 = vector.load %arg2[%c0_11, %c0_12] : memref<128x128xbf16, #tpu.memory_space<vmem>>, vector<128x128xbf16>
    tpu.vector_store %arg2[%c0_11, %c0_12], %18 {strides = array<i32>} : memref<128x128xbf16, #tpu.memory_space<vmem>>, vector<128x128xbf16>,
    return
  }
}

</mosaic_0001>

<bundles_post_ra>
// kernel: tpu_custom_call.1
= control target key start
LH: loop header
LB: loop body
LE: loop exit
PB: predicated region body
PF: predicated region fallthrough
CT: control target
= control target key end

     0   :  { %7 = vsyncpa [#allocation3], 0  ;;  %s3080_s0 = inlined_call_operand.hbm [shape: f32[128,128], index: 0, kind: input, shape index: {}]   ;;  %s3081_s1 = inlined_call_operand.hbm [shape: f32[128,128], index: 1, kind: input, shape index: {}]   ;;  %s3082_s2 = inlined_call_operand.hbm [shape: bf16[128,128], index: 2, kind: output, shape index: {}]  }
   0x1   :  { %8 = vsyncpa [#allocation6], 0 }
   0x2   :  { %9 = vsyncpa [#allocation4], 0  ;;  %s2314_s9 = smov [#allocation2]  }
   0x3   :  { %s15_s10 = sshll.u32 %s2314_s9, 4  ;;  %s16_s10 = int_to_ptr.vmem [resolvable:$true] %s15_s10 }
   0x4   :  { %s2256_s11 = scalar_lea.vmem %s16_s10, 2048  ;;  %p2261_p1 = scmp.lt.s32.totalorder %s16_s10, %s16_s10 }
   0x5   :  { %p2257_p0 = scmp.ne.s32.totalorder %s16_s10, %s2256_s11  ;;  %p2262_p2 = scmp.lt.s32.totalorder %s2256_s11, %s2256_s11 }
   0x7   :  { %p2263_p3 = por %p2262_p2, %p2261_p1 }
   0x9   :  { %p2264_p4 = pnand %p2263_p3, %p2257_p0 }
   0xb   :  { %2267 = shalt.err (!%p2264_p4)
}
   0xc   :  { %s2315_s12 = smov 128   ;;  %s2316_s13 = smov 8  }
   0xd   :  { %21 = dma.hbm_to_vmem [thread:$0]  %s3080_s0, 2048, %s16_s10, [#allocation3], %s2315_s12, %s2315_s12, %s2316_s13  }
   0xe   :  { %s2317_s16 = smov [#allocation5]  }
   0xf   :  { %s27_s17 = sshll.u32 %s2317_s16, 4  ;;  %s28_s17 = int_to_ptr.vmem [resolvable:$true] %s27_s17 }
  0x10   :  { %s2276_s18 = scalar_lea.vmem %s28_s17, 2048  ;;  %p2281_p6 = scmp.lt.s32.totalorder %s28_s17, %s28_s17 }
  0x11   :  { %p2277_p5 = scmp.ne.s32.totalorder %s28_s17, %s2276_s18  ;;  %p2282_p7 = scmp.lt.s32.totalorder %s2276_s18, %s2276_s18 }
  0x13   :  { %p2283_p8 = por %p2282_p7, %p2281_p6 }
  0x15   :  { %p2284_p9 = pnand %p2283_p8, %p2277_p5 }
  0x17   :  { %2287 = shalt.err (!%p2284_p9)
}
  0x18   :  { %33 = dma.hbm_to_vmem [thread:$0]  %s3081_s1, 2048, %s28_s17, [#allocation6], %s2315_s12, %s2315_s12, %s2316_s13  }
  0x19   :  { %2308 = dma.done.wait [#allocation3], 2048  }
  0x1a   :  { %2309 = vsyncadd [#allocation3], 4294965248 }
  0x1b   :  { %2310 = dma.done.wait [#allocation6], 2048  }
  0x1c   :  { %2311 = vsyncadd [#allocation6], 4294965248  ;;  %v40_v0 = vld [vmem:[#allocation2] sm:$0xff]  ;;  %v41_v2 = vld [vmem:[#allocation2 + $0x8] sm:$0xff]  ;;  %s2318_s0 = smov [#allocation7]  }
  0x1d   :  { %v56_v1 = vld [vmem:[#allocation5] sm:$0xff]  ;;  %v57_v4 = vld [vmem:[#allocation5 + $0x8] sm:$0xff]  ;;  %v42_v6 = vld [vmem:[#allocation2 + $0x10] sm:$0xff]  ;;  %s1445_s1 = sshll.u32 %s2318_s0, 4  ;;  %s1446_s1 = int_to_ptr.vmem [resolvable:$true] %s1445_s1 }
  0x1e   :  { %v72_v3 = vsub.f32 %v40_v0, %v56_v1  ;;  %v73_v5 = vsub.f32 %v41_v2, %v57_v4  ;;  %v58_v7 = vld [vmem:[#allocation5 + $0x10] sm:$0xff]  ;;  %v43_v9 = vld [vmem:[#allocation2 + $0x18] sm:$0xff]  ;;  %v44_v12 = vld [vmem:[#allocation2 + $0x20] sm:$0xff]  ;;  %s2288_s21 = scalar_lea.vmem %s1446_s1, 1024  ;;  %p2293_p11 = scmp.lt.s32.totalorder %s1446_s1, %s1446_s1 }
  0x1f   :  { %v74_v8 = vsub.f32 %v42_v6, %v58_v7  ;;  %v59_v10 = vld [vmem:[#allocation5 + $0x18] sm:$0xff]  ;;  %v60_v13 = vld [vmem:[#allocation5 + $0x20] sm:$0xff]  ;;  %v45_v15 = vld [vmem:[#allocation2 + $0x28] sm:$0xff]  ;;  %p2289_p10 = scmp.ne.s32.totalorder %s1446_s1, %s2288_s21  ;;  %p2294_p12 = scmp.lt.s32.totalorder %s2288_s21, %s2288_s21 }
  0x20   :  { %88 = vxpose.xlu0.b32.start [1/16] %v72_v3, 128  ;;  %v75_v11 = vsub.f32 %v43_v9, %v59_v10  ;;  %v76_v14 = vsub.f32 %v44_v12, %v60_v13  ;;  %v61_v16 = vld [vmem:[#allocation5 + $0x28] sm:$0xff]  ;;  %v46_v18 = vld [vmem:[#allocation2 + $0x30] sm:$0xff]  ;;  %v47_v21 = vld [vmem:[#allocation2 + $0x38] sm:$0xff] }
  0x21   :  { %v77_v17 = vsub.f32 %v45_v15, %v61_v16  ;;  %v62_v19 = vld [vmem:[#allocation5 + $0x30] sm:$0xff]  ;;  %v63_v22 = vld [vmem:[#allocation5 + $0x38] sm:$0xff]  ;;  %v48_v24 = vld [vmem:[#allocation2 + $0x40] sm:$0xff]  ;;  %p2295_p13 = por %p2294_p12, %p2293_p11 }
  0x22   :  { %v78_v20 = vsub.f32 %v46_v18, %v62_v19  ;;  %v79_v23 = vsub.f32 %v47_v21, %v63_v22  ;;  %v64_v25 = vld [vmem:[#allocation5 + $0x40] sm:$0xff]  ;;  %v49_v27 = vld [vmem:[#allocation2 + $0x48] sm:$0xff]  ;;  %v50_v30 = vld [vmem:[#allocation2 + $0x50] sm:$0xff] }
  0x23   :  { %v80_v26 = vsub.f32 %v48_v24, %v64_v25  ;;  %v65_v28 = vld [vmem:[#allocation5 + $0x48] sm:$0xff]  ;;  %v66_v31 = vld [vmem:[#allocation5 + $0x50] sm:$0xff]  ;;  %v51_v33 = vld [vmem:[#allocation2 + $0x58] sm:$0xff]  ;;  %p2296_p0 = pnand %p2295_p13, %p2289_p10 }
  0x24   :  { %89 = vxpose.xlu0.b32.cont [2/16] %v73_v5, 128  ;;  %v81_v29 = vsub.f32 %v49_v27, %v65_v28  ;;  %v82_v32 = vsub.f32 %v50_v30, %v66_v31  ;;  %v67_v34 = vld [vmem:[#allocation5 + $0x58] sm:$0xff]  ;;  %v52_v36 = vld [vmem:[#allocation2 + $0x60] sm:$0xff]  ;;  %v53_v39 = vld [vmem:[#allocation2 + $0x68] sm:$0xff] }
  0x25   :  { %v83_v35 = vsub.f32 %v51_v33, %v67_v34  ;;  %v68_v37 = vld [vmem:[#allocation5 + $0x60] sm:$0xff]  ;;  %v69_v40 = vld [vmem:[#allocation5 + $0x68] sm:$0xff]  ;;  %v54_v42 = vld [vmem:[#allocation2 + $0x70] sm:$0xff] }
  0x26   :  { %v84_v38 = vsub.f32 %v52_v36, %v68_v37  ;;  %v85_v41 = vsub.f32 %v53_v39, %v69_v40  ;;  %v70_v43 = vld [vmem:[#allocation5 + $0x70] sm:$0xff]  ;;  %v55_v45 = vld [vmem:[#allocation2 + $0x78] sm:$0xff] }
  0x27   :  { %v86_v44 = vsub.f32 %v54_v42, %v70_v43  ;;  %v71_v46 = vld [vmem:[#allocation5 + $0x78] sm:$0xff] }
  0x28   :  { %90 = vxpose.xlu0.b32.cont [3/16] %v74_v8, 128  ;;  %v87_v47 = vsub.f32 %v55_v45, %v71_v46 }
  0x2c   :  { %91 = vxpose.xlu0.b32.cont [4/16] %v75_v11, 128 }
  0x30   :  { %92 = vxpose.xlu0.b32.cont [5/16] %v76_v14, 128 }
  0x34   :  { %93 = vxpose.xlu0.b32.cont [6/16] %v77_v17, 128 }
  0x38   :  { %94 = vxpose.xlu0.b32.cont [7/16] %v78_v20, 128 }
  0x3c   :  { %95 = vxpose.xlu0.b32.cont [8/16] %v79_v23, 128 }
  0x40   :  { %96 = vxpose.xlu0.b32.cont [9/16] %v80_v26, 128 }
  0x44   :  { %97 = vxpose.xlu0.b32.cont [10/16] %v81_v29, 128 }
  0x48   :  { %98 = vxpose.xlu0.b32.cont [11/16] %v82_v32, 128 }
  0x4c   :  { %99 = vxpose.xlu0.b32.cont [12/16] %v83_v35, 128 }
  0x50   :  { %100 = vxpose.xlu0.b32.cont [13/16] %v84_v38, 128 }
  0x54   :  { %101 = vxpose.xlu0.b32.cont [14/16] %v85_v41, 128 }
  0x58   :  { %102 = vxpose.xlu0.b32.cont [15/16] %v86_v44, 128 }
  0x5c   :  { %103 = vxpose.xlu0.b32.end [16/16] %v87_v47, 128 }
  0x9c   :  { %v2342_v48 = vpop.trf.xlu0 }
  0x9d   :  { %1825 = vmatprep.mubr.f32.mxu0 %v2342_v48 }
  0xa0   :  { %v2345_v49 = vpop.trf.xlu0 }
  0xa4   :  { %v2347_v50 = vpop.trf.xlu0 }
  0xa8   :  { %v2349_v51 = vpop.trf.xlu0 }
  0xac   :  { %v2351_v52 = vpop.trf.xlu0 }
  0xb0   :  { %v2353_v53 = vpop.trf.xlu0 }
  0xb4   :  { %v2355_v54 = vpop.trf.xlu0 }
  0xb8   :  { %v2357_v55 = vpop.trf.xlu0 }
  0xbc   :  { %v2359_v56 = vpop.trf.xlu0 }
  0xc0   :  { %v2361_v57 = vpop.trf.xlu0 }
  0xc4   :  { %v2363_v58 = vpop.trf.xlu0 }
  0xc8   :  { %v2365_v59 = vpop.trf.xlu0 }
  0xcc   :  { %v2367_v60 = vpop.trf.xlu0 }
  0xd0   :  { %v2369_v61 = vpop.trf.xlu0 }
  0xd4   :  { %v2371_v62 = vpop.trf.xlu0 }
  0xd8   :  { %v2373_v63 = vpop.trf.xlu0 }
  0xd9   :  { %1793 = vmatprep.subr.mxu0 %v2373_v63 }
  0xda   :  { %1794 = vmatpush3.msra.mxu0 %v2373_v63 }
  0xdb   :  { %1795 = vmatprep.subr.mxu0 %v2371_v62 }
  0xdc   :  { %1796 = vmatpush3.msra.mxu0 %v2371_v62 }
  0xdd   :  { %1797 = vmatprep.subr.mxu0 %v2369_v61 }
  0xde   :  { %1798 = vmatpush3.msra.mxu0 %v2369_v61 }
  0xdf   :  { %1799 = vmatprep.subr.mxu0 %v2367_v60 }
  0xe0   :  { %1800 = vmatpush3.msra.mxu0 %v2367_v60 }
  0xe1   :  { %1801 = vmatprep.subr.mxu0 %v2365_v59 }
  0xe2   :  { %1802 = vmatpush3.msra.mxu0 %v2365_v59 }
  0xe3   :  { %1803 = vmatprep.subr.mxu0 %v2363_v58 }
  0xe4   :  { %1804 = vmatpush3.msra.mxu0 %v2363_v58 }
  0xe5   :  { %1805 = vmatprep.subr.mxu0 %v2361_v57 }
  0xe6   :  { %1806 = vmatpush3.msra.mxu0 %v2361_v57 }
  0xe7   :  { %1807 = vmatprep.subr.mxu0 %v2359_v56 }
  0xe8   :  { %1808 = vmatpush3.msra.mxu0 %v2359_v56 }
  0xe9   :  { %1809 = vmatprep.subr.mxu0 %v2357_v55 }
  0xea   :  { %1810 = vmatpush3.msra.mxu0 %v2357_v55 }
  0xeb   :  { %1811 = vmatprep.subr.mxu0 %v2355_v54 }
  0xec   :  { %1812 = vmatpush3.msra.mxu0 %v2355_v54 }
  0xed   :  { %1813 = vmatprep.subr.mxu0 %v2353_v53 }
  0xee   :  { %1814 = vmatpush3.msra.mxu0 %v2353_v53 }
  0xef   :  { %1815 = vmatprep.subr.mxu0 %v2351_v52 }
  0xf0   :  { %1816 = vmatpush3.msra.mxu0 %v2351_v52 }
  0xf1   :  { %1817 = vmatprep.subr.mxu0 %v2349_v51 }
  0xf2   :  { %1818 = vmatpush3.msra.mxu0 %v2349_v51 }
  0xf3   :  { %1819 = vmatprep.subr.mxu0 %v2347_v50 }
  0xf4   :  { %1820 = vmatpush3.msra.mxu0 %v2347_v50 }
  0xf5   :  { %1821 = vmatprep.subr.mxu0 %v2345_v49 }
  0xf6   :  { %1822 = vmatpush3.msra.mxu0 %v2345_v49 }
  0xf7   :  { %1823 = vmatprep.subr.mxu0 %v2342_v48 }
  0xf8   :  { %1824 = vmatpush3.msra.mxu0 %v2342_v48 }
  0xf9   :  { %1826 = vmatmul.mubr.f32.vlgmr.msra.gmra.mxu0 %v2345_v49 }
  0xfa   :  { %1828 = vmatprep.mubr.f32.mxu0 %v2347_v50 }
  0xfd   :  { %1829 = vmatmul.mubr.f32.gmra.mxu0 %v2349_v51 }
  0xfe   :  { %1831 = vmatprep.mubr.f32.mxu0 %v2351_v52 }
 0x101   :  { %1832 = vmatmul.mubr.f32.gmra.mxu0 %v2353_v53 }
 0x102   :  { %1834 = vmatprep.mubr.f32.mxu0 %v2355_v54 }
 0x105   :  { %1835 = vmatmul.mubr.f32.gmra.mxu0 %v2357_v55 }
 0x106   :  { %1837 = vmatprep.mubr.f32.mxu0 %v2359_v56 }
 0x109   :  { %1838 = vmatmul.mubr.f32.gmra.mxu0 %v2361_v57 }
 0x10a   :  { %1840 = vmatprep.mubr.f32.mxu0 %v2363_v58 }
 0x10d   :  { %1841 = vmatmul.mubr.f32.gmra.mxu0 %v2365_v59 }
 0x10e   :  { %1843 = vmatprep.mubr.f32.mxu0 %v2367_v60 }
 0x111   :  { %1844 = vmatmul.mubr.f32.gmra.mxu0 %v2369_v61 }
 0x112   :  { %1846 = vmatprep.mubr.f32.mxu0 %v2371_v62 }
 0x115   :  { %1847 = vmatmul.mubr.f32.gmra.mxu0 %v2373_v63 }
 0x1b9   :  { %v2422_v0 = vpop.f32.mrf.mxu0 }
 0x1ba   :  { %v2570_v30 = vadd.f32 %v2422_v0, %v2345_v49 }
 0x1bb   :  { %v2424_v1 = vpop.f32.mrf.mxu0 }
 0x1bc   :  { %1881 = vmatprep.mubr.f32.mxu1 %v2424_v1  ;;  %1937 = vmatprep.mubr.f32.mxu0 %v2424_v1  ;;  %v2578_v31 = vadd.f32 %v2424_v1, %v2342_v48 }
 0x1bd   :  { %v2428_v2 = vpop.f32.mrf.mxu0 }
 0x1be   :  { %v2554_v28 = vadd.f32 %v2428_v2, %v2349_v51 }
 0x1bf   :  { %v2430_v3 = vpop.f32.mrf.mxu0 }
 0x1c0   :  { %v2562_v29 = vadd.f32 %v2430_v3, %v2347_v50 }
 0x1c1   :  { %v2432_v4 = vpop.f32.mrf.mxu0 }
 0x1c2   :  { %v2538_v26 = vadd.f32 %v2432_v4, %v2353_v53 }
 0x1c3   :  { %v2434_v5 = vpop.f32.mrf.mxu0 }
 0x1c4   :  { %v2546_v27 = vadd.f32 %v2434_v5, %v2351_v52 }
 0x1c5   :  { %v2436_v6 = vpop.f32.mrf.mxu0 }
 0x1c6   :  { %v2522_v24 = vadd.f32 %v2436_v6, %v2357_v55 }
 0x1c7   :  { %v2438_v7 = vpop.f32.mrf.mxu0 }
 0x1c8   :  { %v2530_v25 = vadd.f32 %v2438_v7, %v2355_v54 }
 0x1c9   :  { %v2440_v8 = vpop.f32.mrf.mxu0 }
 0x1ca   :  { %v2506_v22 = vadd.f32 %v2440_v8, %v2361_v57 }
 0x1cb   :  { %v2442_v9 = vpop.f32.mrf.mxu0 }
 0x1cc   :  { %v2514_v23 = vadd.f32 %v2442_v9, %v2359_v56 }
 0x1cd   :  { %v2444_v10 = vpop.f32.mrf.mxu0 }
 0x1ce   :  { %v2490_v20 = vadd.f32 %v2444_v10, %v2365_v59 }
 0x1cf   :  { %v2446_v11 = vpop.f32.mrf.mxu0 }
 0x1d0   :  { %v2498_v21 = vadd.f32 %v2446_v11, %v2363_v58 }
 0x1d1   :  { %v2448_v12 = vpop.f32.mrf.mxu0 }
 0x1d2   :  { %v2474_v18 = vadd.f32 %v2448_v12, %v2369_v61 }
 0x1d3   :  { %v2450_v13 = vpop.f32.mrf.mxu0 }
 0x1d4   :  { %v2482_v19 = vadd.f32 %v2450_v13, %v2367_v60 }
 0x1d5   :  { %v2452_v14 = vpop.f32.mrf.mxu0 }
 0x1d6   :  { %1905 = vmatprep.subr.mxu0 %v2452_v14  ;;  %v2457_v15 = vadd.f32 %v2452_v14, %v2373_v63 }
 0x1d7   :  { %v2459_v16 = vpop.f32.mrf.mxu0  ;;  %1906 = vmatpush3.msra.mxu0 %v2452_v14 }
 0x1d8   :  { %1849 = vmatprep.subr.mxu1 %v2457_v15  ;;  %1907 = vmatprep.subr.mxu0 %v2459_v16  ;;  %v2466_v17 = vadd.f32 %v2459_v16, %v2371_v62 }
 0x1d9   :  { %1850 = vmatpush3.msra.mxu1 %v2457_v15  ;;  %1908 = vmatpush3.msra.mxu0 %v2459_v16 }
 0x1da   :  { %1851 = vmatprep.subr.mxu1 %v2466_v17  ;;  %1909 = vmatprep.subr.mxu0 %v2448_v12 }
 0x1db   :  { %1852 = vmatpush3.msra.mxu1 %v2466_v17  ;;  %1910 = vmatpush3.msra.mxu0 %v2448_v12 }
 0x1dc   :  { %1853 = vmatprep.subr.mxu1 %v2474_v18  ;;  %1911 = vmatprep.subr.mxu0 %v2450_v13 }
 0x1dd   :  { %1854 = vmatpush3.msra.mxu1 %v2474_v18  ;;  %1912 = vmatpush3.msra.mxu0 %v2450_v13 }
 0x1de   :  { %1855 = vmatprep.subr.mxu1 %v2482_v19  ;;  %1913 = vmatprep.subr.mxu0 %v2444_v10 }
 0x1df   :  { %1856 = vmatpush3.msra.mxu1 %v2482_v19  ;;  %1914 = vmatpush3.msra.mxu0 %v2444_v10 }
 0x1e0   :  { %1857 = vmatprep.subr.mxu1 %v2490_v20  ;;  %1915 = vmatprep.subr.mxu0 %v2446_v11 }
 0x1e1   :  { %1858 = vmatpush3.msra.mxu1 %v2490_v20  ;;  %1916 = vmatpush3.msra.mxu0 %v2446_v11 }
 0x1e2   :  { %1859 = vmatprep.subr.mxu1 %v2498_v21  ;;  %1917 = vmatprep.subr.mxu0 %v2440_v8 }
 0x1e3   :  { %1860 = vmatpush3.msra.mxu1 %v2498_v21  ;;  %1918 = vmatpush3.msra.mxu0 %v2440_v8 }
 0x1e4   :  { %1861 = vmatprep.subr.mxu1 %v2506_v22  ;;  %1919 = vmatprep.subr.mxu0 %v2442_v9 }
 0x1e5   :  { %1862 = vmatpush3.msra.mxu1 %v2506_v22  ;;  %1920 = vmatpush3.msra.mxu0 %v2442_v9 }
 0x1e6   :  { %1863 = vmatprep.subr.mxu1 %v2514_v23  ;;  %1921 = vmatprep.subr.mxu0 %v2436_v6 }
 0x1e7   :  { %1864 = vmatpush3.msra.mxu1 %v2514_v23  ;;  %1922 = vmatpush3.msra.mxu0 %v2436_v6 }
 0x1e8   :  { %1865 = vmatprep.subr.mxu1 %v2522_v24  ;;  %1923 = vmatprep.subr.mxu0 %v2438_v7 }
 0x1e9   :  { %1866 = vmatpush3.msra.mxu1 %v2522_v24  ;;  %1924 = vmatpush3.msra.mxu0 %v2438_v7 }
 0x1ea   :  { %1867 = vmatprep.subr.mxu1 %v2530_v25  ;;  %1925 = vmatprep.subr.mxu0 %v2432_v4 }
 0x1eb   :  { %1868 = vmatpush3.msra.mxu1 %v2530_v25  ;;  %1926 = vmatpush3.msra.mxu0 %v2432_v4 }
 0x1ec   :  { %1869 = vmatprep.subr.mxu1 %v2538_v26  ;;  %1927 = vmatprep.subr.mxu0 %v2434_v5 }
 0x1ed   :  { %1870 = vmatpush3.msra.mxu1 %v2538_v26  ;;  %1928 = vmatpush3.msra.mxu0 %v2434_v5 }
 0x1ee   :  { %1871 = vmatprep.subr.mxu1 %v2546_v27  ;;  %1929 = vmatprep.subr.mxu0 %v2428_v2 }
 0x1ef   :  { %1872 = vmatpush3.msra.mxu1 %v2546_v27  ;;  %1930 = vmatpush3.msra.mxu0 %v2428_v2 }
 0x1f0   :  { %1873 = vmatprep.subr.mxu1 %v2554_v28  ;;  %1931 = vmatprep.subr.mxu0 %v2430_v3 }
 0x1f1   :  { %1874 = vmatpush3.msra.mxu1 %v2554_v28  ;;  %1932 = vmatpush3.msra.mxu0 %v2430_v3 }
 0x1f2   :  { %1875 = vmatprep.subr.mxu1 %v2562_v29  ;;  %1933 = vmatprep.subr.mxu0 %v2422_v0 }
 0x1f3   :  { %1876 = vmatpush3.msra.mxu1 %v2562_v29  ;;  %1934 = vmatpush3.msra.mxu0 %v2422_v0 }
 0x1f4   :  { %1877 = vmatprep.subr.mxu1 %v2570_v30  ;;  %1935 = vmatprep.subr.mxu0 %v2424_v1 }
 0x1f5   :  { %1878 = vmatpush3.msra.mxu1 %v2570_v30  ;;  %1936 = vmatpush3.msra.mxu0 %v2424_v1 }
 0x1f6   :  { %1879 = vmatprep.subr.mxu1 %v2578_v31  ;;  %1938 = vmatmul.mubr.f32.vlgmr.msra.gmra.mxu0 %v2422_v0 }
 0x1f7   :  { %1880 = vmatpush3.msra.mxu1 %v2578_v31  ;;  %1940 = vmatprep.mubr.f32.mxu0 %v2430_v3 }
 0x1f8   :  { %1882 = vmatmul.mubr.f32.vlgmr.msra.gmra.mxu1 %v2422_v0 }
 0x1f9   :  { %1884 = vmatprep.mubr.f32.mxu1 %v2430_v3 }
 0x1fa   :  { %1941 = vmatmul.mubr.f32.gmra.mxu0 %v2428_v2 }
 0x1fb   :  { %1943 = vmatprep.mubr.f32.mxu0 %v2434_v5 }
 0x1fc   :  { %1885 = vmatmul.mubr.f32.gmra.mxu1 %v2428_v2 }
 0x1fd   :  { %1887 = vmatprep.mubr.f32.mxu1 %v2434_v5 }
 0x1fe   :  { %1944 = vmatmul.mubr.f32.gmra.mxu0 %v2432_v4 }
 0x1ff   :  { %1946 = vmatprep.mubr.f32.mxu0 %v2438_v7 }
 0x200   :  { %1888 = vmatmul.mubr.f32.gmra.mxu1 %v2432_v4 }
 0x201   :  { %1890 = vmatprep.mubr.f32.mxu1 %v2438_v7 }
 0x202   :  { %1947 = vmatmul.mubr.f32.gmra.mxu0 %v2436_v6 }
 0x203   :  { %1949 = vmatprep.mubr.f32.mxu0 %v2442_v9 }
 0x204   :  { %1891 = vmatmul.mubr.f32.gmra.mxu1 %v2436_v6 }
 0x205   :  { %1893 = vmatprep.mubr.f32.mxu1 %v2442_v9 }
 0x206   :  { %1950 = vmatmul.mubr.f32.gmra.mxu0 %v2440_v8 }
 0x207   :  { %1952 = vmatprep.mubr.f32.mxu0 %v2446_v11 }
 0x208   :  { %1894 = vmatmul.mubr.f32.gmra.mxu1 %v2440_v8 }
 0x209   :  { %1896 = vmatprep.mubr.f32.mxu1 %v2446_v11 }
 0x20a   :  { %1953 = vmatmul.mubr.f32.gmra.mxu0 %v2444_v10 }
 0x20b   :  { %1955 = vmatprep.mubr.f32.mxu0 %v2450_v13 }
 0x20c   :  { %1897 = vmatmul.mubr.f32.gmra.mxu1 %v2444_v10 }
 0x20d   :  { %1899 = vmatprep.mubr.f32.mxu1 %v2450_v13 }
 0x20e   :  { %1956 = vmatmul.mubr.f32.gmra.mxu0 %v2448_v12 }
 0x20f   :  { %1958 = vmatprep.mubr.f32.mxu0 %v2459_v16 }
 0x210   :  { %1900 = vmatmul.mubr.f32.gmra.mxu1 %v2448_v12 }
 0x211   :  { %1902 = vmatprep.mubr.f32.mxu1 %v2459_v16 }
 0x212   :  { %1959 = vmatmul.mubr.f32.gmra.mxu0 %v2452_v14 }
 0x214   :  { %1903 = vmatmul.mubr.f32.gmra.mxu1 %v2452_v14 }
 0x2b6   :  { %v2614_v32 = vpop.f32.mrf.mxu0 }
 0x2b8   :  { %v2616_v33 = vpop.f32.mrf.mxu1  ;;  %v2618_v34 = vpop.f32.mrf.mxu0 }
 0x2b9   :  { %1993 = vmatprep.mubr.f32.mxu1 %v2618_v34  ;;  %2049 = vmatprep.mubr.f32.mxu0 %v2618_v34  ;;  %v2764_v14 = vadd.f32 %v2616_v33, %v2570_v30 }
 0x2ba   :  { %v2622_v35 = vpop.f32.mrf.mxu1  ;;  %v2624_v36 = vpop.f32.mrf.mxu0 }
 0x2bc   :  { %v2626_v37 = vpop.f32.mrf.mxu1  ;;  %v2628_v38 = vpop.f32.mrf.mxu0 }
 0x2bd   :  { %v2748_v12 = vadd.f32 %v2626_v37, %v2554_v28 }
 0x2be   :  { %v2630_v39 = vpop.f32.mrf.mxu1  ;;  %v2632_v40 = vpop.f32.mrf.mxu0 }
 0x2bf   :  { %v2756_v13 = vadd.f32 %v2630_v39, %v2562_v29 }
 0x2c0   :  { %v2634_v41 = vpop.f32.mrf.mxu1  ;;  %v2636_v42 = vpop.f32.mrf.mxu0 }
 0x2c1   :  { %v2732_v10 = vadd.f32 %v2634_v41, %v2538_v26 }
 0x2c2   :  { %v2638_v43 = vpop.f32.mrf.mxu1  ;;  %v2640_v44 = vpop.f32.mrf.mxu0 }
 0x2c3   :  { %v2740_v11 = vadd.f32 %v2638_v43, %v2546_v27 }
 0x2c4   :  { %v1892_v45 = vpop.f32.mrf.mxu1  ;;  %v2642_v46 = vpop.f32.mrf.mxu0 }
 0x2c5   :  { %v2717_v8 = vadd.f32 %v1892_v45, %v2522_v24 }
 0x2c6   :  { %v377_v47 = vpop.f32.mrf.mxu1  ;;  %v2644_v48 = vpop.f32.mrf.mxu0 }
 0x2c7   :  { %v2724_v9 = vadd.f32 %v377_v47, %v2530_v25 }
 0x2c8   :  { %v1895_v49 = vpop.f32.mrf.mxu1  ;;  %v2646_v50 = vpop.f32.mrf.mxu0 }
 0x2c9   :  { %v2703_v6 = vadd.f32 %v1895_v49, %v2506_v22 }
 0x2ca   :  { %v387_v51 = vpop.f32.mrf.mxu1  ;;  %v2648_v52 = vpop.f32.mrf.mxu0 }
 0x2cb   :  { %v2710_v7 = vadd.f32 %v387_v51, %v2514_v23 }
 0x2cc   :  { %v1898_v53 = vpop.f32.mrf.mxu1  ;;  %v2650_v54 = vpop.f32.mrf.mxu0 }
 0x2cd   :  { %v2689_v4 = vadd.f32 %v1898_v53, %v2490_v20 }
 0x2ce   :  { %v397_v55 = vpop.f32.mrf.mxu1  ;;  %v2652_v56 = vpop.f32.mrf.mxu0 }
 0x2cf   :  { %v2696_v5 = vadd.f32 %v397_v55, %v2498_v21 }
 0x2d0   :  { %v1901_v57 = vpop.f32.mrf.mxu1  ;;  %v2654_v58 = vpop.f32.mrf.mxu0 }
 0x2d1   :  { %v2675_v2 = vadd.f32 %v1901_v57, %v2474_v18 }
 0x2d2   :  { %v407_v59 = vpop.f32.mrf.mxu1  ;;  %v2656_v60 = vpop.f32.mrf.mxu0 }
 0x2d3   :  { %2017 = vmatprep.subr.mxu0 %v2656_v60  ;;  %v2682_v3 = vadd.f32 %v407_v59, %v2482_v19 }
 0x2d4   :  { %v1904_v61 = vpop.f32.mrf.mxu1  ;;  %v2659_v62 = vpop.f32.mrf.mxu0  ;;  %2018 = vmatpush3.msra.mxu0 %v2656_v60 }
 0x2d5   :  { %v2663_v63 = vadd.f32 %v1904_v61, %v2457_v15  ;;  %2019 = vmatprep.subr.mxu0 %v2659_v62  ;;  %v2772_v15 = vadd.f32 %v2622_v35, %v2578_v31 }
 0x2d6   :  { %v417_v0 = vpop.f32.mrf.mxu1  ;;  %2020 = vmatpush3.msra.mxu0 %v2659_v62 }
 0x2d7   :  { %v2668_v1 = vadd.f32 %v417_v0, %v2466_v17  ;;  %1961 = vmatprep.subr.mxu1 %v2663_v63  ;;  %2021 = vmatprep.subr.mxu0 %v2652_v56 }
 0x2d8   :  { %1962 = vmatpush3.msra.mxu1 %v2663_v63  ;;  %2022 = vmatpush3.msra.mxu0 %v2652_v56 }
 0x2d9   :  { %1963 = vmatprep.subr.mxu1 %v2668_v1  ;;  %2023 = vmatprep.subr.mxu0 %v2654_v58 }
 0x2da   :  { %1964 = vmatpush3.msra.mxu1 %v2668_v1  ;;  %2024 = vmatpush3.msra.mxu0 %v2654_v58 }
 0x2db   :  { %1965 = vmatprep.subr.mxu1 %v2675_v2  ;;  %2025 = vmatprep.subr.mxu0 %v2648_v52 }
 0x2dc   :  { %1966 = vmatpush3.msra.mxu1 %v2675_v2  ;;  %2026 = vmatpush3.msra.mxu0 %v2648_v52 }
 0x2dd   :  { %1967 = vmatprep.subr.mxu1 %v2682_v3  ;;  %2027 = vmatprep.subr.mxu0 %v2650_v54 }
 0x2de   :  { %1968 = vmatpush3.msra.mxu1 %v2682_v3  ;;  %2028 = vmatpush3.msra.mxu0 %v2650_v54 }
 0x2df   :  { %1969 = vmatprep.subr.mxu1 %v2689_v4  ;;  %2029 = vmatprep.subr.mxu0 %v2644_v48 }
 0x2e0   :  { %1970 = vmatpush3.msra.mxu1 %v2689_v4  ;;  %2030 = vmatpush3.msra.mxu0 %v2644_v48 }
 0x2e1   :  { %1971 = vmatprep.subr.mxu1 %v2696_v5  ;;  %2031 = vmatprep.subr.mxu0 %v2646_v50 }
 0x2e2   :  { %1972 = vmatpush3.msra.mxu1 %v2696_v5  ;;  %2032 = vmatpush3.msra.mxu0 %v2646_v50 }
 0x2e3   :  { %1973 = vmatprep.subr.mxu1 %v2703_v6  ;;  %2033 = vmatprep.subr.mxu0 %v2640_v44 }
 0x2e4   :  { %1974 = vmatpush3.msra.mxu1 %v2703_v6  ;;  %2034 = vmatpush3.msra.mxu0 %v2640_v44 }
 0x2e5   :  { %1975 = vmatprep.subr.mxu1 %v2710_v7  ;;  %2035 = vmatprep.subr.mxu0 %v2642_v46 }
 0x2e6   :  { %1976 = vmatpush3.msra.mxu1 %v2710_v7  ;;  %2036 = vmatpush3.msra.mxu0 %v2642_v46 }
 0x2e7   :  { %1977 = vmatprep.subr.mxu1 %v2717_v8  ;;  %2037 = vmatprep.subr.mxu0 %v2632_v40 }
 0x2e8   :  { %1978 = vmatpush3.msra.mxu1 %v2717_v8  ;;  %2038 = vmatpush3.msra.mxu0 %v2632_v40 }
 0x2e9   :  { %1979 = vmatprep.subr.mxu1 %v2724_v9  ;;  %2039 = vmatprep.subr.mxu0 %v2636_v42 }
 0x2ea   :  { %1980 = vmatpush3.msra.mxu1 %v2724_v9  ;;  %2040 = vmatpush3.msra.mxu0 %v2636_v42 }
 0x2eb   :  { %1981 = vmatprep.subr.mxu1 %v2732_v10  ;;  %2041 = vmatprep.subr.mxu0 %v2624_v36 }
 0x2ec   :  { %1982 = vmatpush3.msra.mxu1 %v2732_v10  ;;  %2042 = vmatpush3.msra.mxu0 %v2624_v36 }
 0x2ed   :  { %1983 = vmatprep.subr.mxu1 %v2740_v11  ;;  %2043 = vmatprep.subr.mxu0 %v2628_v38 }
 0x2ee   :  { %1984 = vmatpush3.msra.mxu1 %v2740_v11  ;;  %2044 = vmatpush3.msra.mxu0 %v2628_v38 }
 0x2ef   :  { %1985 = vmatprep.subr.mxu1 %v2748_v12  ;;  %2045 = vmatprep.subr.mxu0 %v2614_v32 }
 0x2f0   :  { %1986 = vmatpush3.msra.mxu1 %v2748_v12  ;;  %2046 = vmatpush3.msra.mxu0 %v2614_v32 }
 0x2f1   :  { %1987 = vmatprep.subr.mxu1 %v2756_v13  ;;  %2047 = vmatprep.subr.mxu0 %v2618_v34 }
 0x2f2   :  { %1988 = vmatpush3.msra.mxu1 %v2756_v13  ;;  %2048 = vmatpush3.msra.mxu0 %v2618_v34 }
 0x2f3   :  { %1989 = vmatprep.subr.mxu1 %v2764_v14  ;;  %2050 = vmatmul.mubr.f32.vlgmr.msra.gmra.mxu0 %v2614_v32 }
 0x2f4   :  { %1990 = vmatpush3.msra.mxu1 %v2764_v14  ;;  %2052 = vmatprep.mubr.f32.mxu0 %v2628_v38 }
 0x2f5   :  { %1991 = vmatprep.subr.mxu1 %v2772_v15 }
 0x2f6   :  { %1992 = vmatpush3.msra.mxu1 %v2772_v15 }
 0x2f7   :  { %1994 = vmatmul.mubr.f32.vlgmr.msra.gmra.mxu1 %v2614_v32  ;;  %2053 = vmatmul.mubr.f32.gmra.mxu0 %v2624_v36 }
 0x2f8   :  { %1996 = vmatprep.mubr.f32.mxu1 %v2628_v38  ;;  %2055 = vmatprep.mubr.f32.mxu0 %v2636_v42 }
 0x2fb   :  { %1997 = vmatmul.mubr.f32.gmra.mxu1 %v2624_v36  ;;  %2056 = vmatmul.mubr.f32.gmra.mxu0 %v2632_v40 }
 0x2fc   :  { %1999 = vmatprep.mubr.f32.mxu1 %v2636_v42  ;;  %2058 = vmatprep.mubr.f32.mxu0 %v2642_v46 }
 0x2ff   :  { %2000 = vmatmul.mubr.f32.gmra.mxu1 %v2632_v40  ;;  %2059 = vmatmul.mubr.f32.gmra.mxu0 %v2640_v44 }
 0x300   :  { %2002 = vmatprep.mubr.f32.mxu1 %v2642_v46  ;;  %2061 = vmatprep.mubr.f32.mxu0 %v2646_v50 }
 0x303   :  { %2003 = vmatmul.mubr.f32.gmra.mxu1 %v2640_v44  ;;  %2062 = vmatmul.mubr.f32.gmra.mxu0 %v2644_v48 }
 0x304   :  { %2005 = vmatprep.mubr.f32.mxu1 %v2646_v50  ;;  %2064 = vmatprep.mubr.f32.mxu0 %v2650_v54 }
 0x307   :  { %2006 = vmatmul.mubr.f32.gmra.mxu1 %v2644_v48  ;;  %2065 = vmatmul.mubr.f32.gmra.mxu0 %v2648_v52 }
 0x308   :  { %2008 = vmatprep.mubr.f32.mxu1 %v2650_v54  ;;  %2067 = vmatprep.mubr.f32.mxu0 %v2654_v58 }
 0x30b   :  { %2009 = vmatmul.mubr.f32.gmra.mxu1 %v2648_v52  ;;  %2068 = vmatmul.mubr.f32.gmra.mxu0 %v2652_v56 }
 0x30c   :  { %2011 = vmatprep.mubr.f32.mxu1 %v2654_v58  ;;  %2070 = vmatprep.mubr.f32.mxu0 %v2659_v62 }
 0x30f   :  { %2012 = vmatmul.mubr.f32.gmra.mxu1 %v2652_v56  ;;  %2071 = vmatmul.mubr.f32.gmra.mxu0 %v2656_v60 }
 0x310   :  { %2014 = vmatprep.mubr.f32.mxu1 %v2659_v62 }
 0x313   :  { %2015 = vmatmul.mubr.f32.gmra.mxu1 %v2656_v60 }
 0x3b3   :  { %v2808_v16 = vpop.f32.mrf.mxu0 }
 0x3b5   :  { %v2810_v17 = vpop.f32.mrf.mxu0 }
 0x3b6   :  { %2105 = vmatprep.mubr.f32.mxu1 %v2810_v17  ;;  %2161 = vmatprep.mubr.f32.mxu0 %v2810_v17 }
 0x3b7   :  { %v2814_v18 = vpop.f32.mrf.mxu1  ;;  %v2816_v19 = vpop.f32.mrf.mxu0 }
 0x3b8   :  { %v2963_v62 = vadd.f32 %v2814_v18, %v2764_v14 }
 0x3b9   :  { %v2818_v20 = vpop.f32.mrf.mxu1  ;;  %v2820_v21 = vpop.f32.mrf.mxu0 }
 0x3bb   :  { %v2822_v22 = vpop.f32.mrf.mxu1  ;;  %v2824_v23 = vpop.f32.mrf.mxu0 }
 0x3bc   :  { %v2947_v60 = vadd.f32 %v2822_v22, %v2748_v12 }
 0x3bd   :  { %v2826_v24 = vpop.f32.mrf.mxu1  ;;  %v2828_v25 = vpop.f32.mrf.mxu0 }
 0x3be   :  { %v2955_v61 = vadd.f32 %v2826_v24, %v2756_v13 }
 0x3bf   :  { %v2830_v26 = vpop.f32.mrf.mxu1  ;;  %v2832_v27 = vpop.f32.mrf.mxu0 }
 0x3c0   :  { %v2931_v58 = vadd.f32 %v2830_v26, %v2732_v10 }
 0x3c1   :  { %v2834_v28 = vpop.f32.mrf.mxu1  ;;  %v2836_v29 = vpop.f32.mrf.mxu0 }
 0x3c2   :  { %v2939_v59 = vadd.f32 %v2834_v28, %v2740_v11 }
 0x3c3   :  { %v2004_v30 = vpop.f32.mrf.mxu1  ;;  %v2838_v31 = vpop.f32.mrf.mxu0 }
 0x3c4   :  { %v2915_v56 = vadd.f32 %v2004_v30, %v2717_v8 }
 0x3c5   :  { %v2840_v32 = vpop.f32.mrf.mxu1  ;;  %v2842_v33 = vpop.f32.mrf.mxu0 }
 0x3c6   :  { %v2923_v57 = vadd.f32 %v2840_v32, %v2724_v9 }
 0x3c7   :  { %v2007_v34 = vpop.f32.mrf.mxu1  ;;  %v2844_v35 = vpop.f32.mrf.mxu0 }
 0x3c8   :  { %v2901_v54 = vadd.f32 %v2007_v34, %v2703_v6 }
 0x3c9   :  { %v693_v36 = vpop.f32.mrf.mxu1  ;;  %v2846_v37 = vpop.f32.mrf.mxu0 }
 0x3ca   :  { %v2908_v55 = vadd.f32 %v693_v36, %v2710_v7 }
 0x3cb   :  { %v2010_v38 = vpop.f32.mrf.mxu1  ;;  %v2848_v39 = vpop.f32.mrf.mxu0 }
 0x3cc   :  { %v2887_v52 = vadd.f32 %v2010_v38, %v2689_v4 }
 0x3cd   :  { %v703_v40 = vpop.f32.mrf.mxu1  ;;  %v2850_v41 = vpop.f32.mrf.mxu0 }
 0x3ce   :  { %v2894_v53 = vadd.f32 %v703_v40, %v2696_v5 }
 0x3cf   :  { %v2013_v42 = vpop.f32.mrf.mxu1  ;;  %v2852_v43 = vpop.f32.mrf.mxu0 }
 0x3d0   :  { %2129 = vmatprep.subr.mxu0 %v2852_v43  ;;  %v2873_v50 = vadd.f32 %v2013_v42, %v2675_v2 }
 0x3d1   :  { %v713_v44 = vpop.f32.mrf.mxu1  ;;  %v2855_v45 = vpop.f32.mrf.mxu0  ;;  %2130 = vmatpush3.msra.mxu0 %v2852_v43 }
 0x3d2   :  { %2131 = vmatprep.subr.mxu0 %v2855_v45  ;;  %v2880_v51 = vadd.f32 %v713_v44, %v2682_v3 }
 0x3d3   :  { %v2016_v46 = vpop.f32.mrf.mxu1  ;;  %2132 = vmatpush3.msra.mxu0 %v2855_v45 }
 0x3d4   :  { %v2861_v47 = vadd.f32 %v2016_v46, %v2663_v63  ;;  %2133 = vmatprep.subr.mxu0 %v2848_v39  ;;  %v2971_v63 = vadd.f32 %v2818_v20, %v2772_v15 }
 0x3d5   :  { %v723_v48 = vpop.f32.mrf.mxu1  ;;  %2134 = vmatpush3.msra.mxu0 %v2848_v39 }
 0x3d6   :  { %v2866_v49 = vadd.f32 %v723_v48, %v2668_v1  ;;  %2073 = vmatprep.subr.mxu1 %v2861_v47  ;;  %2135 = vmatprep.subr.mxu0 %v2850_v41 }
 0x3d7   :  { %2074 = vmatpush3.msra.mxu1 %v2861_v47  ;;  %2136 = vmatpush3.msra.mxu0 %v2850_v41 }
 0x3d8   :  { %2075 = vmatprep.subr.mxu1 %v2866_v49  ;;  %2137 = vmatprep.subr.mxu0 %v2844_v35 }
 0x3d9   :  { %2076 = vmatpush3.msra.mxu1 %v2866_v49  ;;  %2138 = vmatpush3.msra.mxu0 %v2844_v35 }
 0x3da   :  { %2077 = vmatprep.subr.mxu1 %v2873_v50  ;;  %2139 = vmatprep.subr.mxu0 %v2846_v37 }
 0x3db   :  { %2078 = vmatpush3.msra.mxu1 %v2873_v50  ;;  %2140 = vmatpush3.msra.mxu0 %v2846_v37 }
 0x3dc   :  { %2079 = vmatprep.subr.mxu1 %v2880_v51  ;;  %2141 = vmatprep.subr.mxu0 %v2838_v31 }
 0x3dd   :  { %2080 = vmatpush3.msra.mxu1 %v2880_v51  ;;  %2142 = vmatpush3.msra.mxu0 %v2838_v31 }
 0x3de   :  { %2081 = vmatprep.subr.mxu1 %v2887_v52  ;;  %2143 = vmatprep.subr.mxu0 %v2842_v33 }
 0x3df   :  { %2082 = vmatpush3.msra.mxu1 %v2887_v52  ;;  %2144 = vmatpush3.msra.mxu0 %v2842_v33 }
 0x3e0   :  { %2083 = vmatprep.subr.mxu1 %v2894_v53  ;;  %2145 = vmatprep.subr.mxu0 %v2832_v27 }
 0x3e1   :  { %2084 = vmatpush3.msra.mxu1 %v2894_v53  ;;  %2146 = vmatpush3.msra.mxu0 %v2832_v27 }
 0x3e2   :  { %2085 = vmatprep.subr.mxu1 %v2901_v54  ;;  %2147 = vmatprep.subr.mxu0 %v2836_v29 }
 0x3e3   :  { %2086 = vmatpush3.msra.mxu1 %v2901_v54  ;;  %2148 = vmatpush3.msra.mxu0 %v2836_v29 }
 0x3e4   :  { %2087 = vmatprep.subr.mxu1 %v2908_v55  ;;  %2149 = vmatprep.subr.mxu0 %v2824_v23 }
 0x3e5   :  { %2088 = vmatpush3.msra.mxu1 %v2908_v55  ;;  %2150 = vmatpush3.msra.mxu0 %v2824_v23 }
 0x3e6   :  { %2089 = vmatprep.subr.mxu1 %v2915_v56  ;;  %2151 = vmatprep.subr.mxu0 %v2828_v25 }
 0x3e7   :  { %2090 = vmatpush3.msra.mxu1 %v2915_v56  ;;  %2152 = vmatpush3.msra.mxu0 %v2828_v25 }
 0x3e8   :  { %2091 = vmatprep.subr.mxu1 %v2923_v57  ;;  %2153 = vmatprep.subr.mxu0 %v2816_v19 }
 0x3e9   :  { %2092 = vmatpush3.msra.mxu1 %v2923_v57  ;;  %2154 = vmatpush3.msra.mxu0 %v2816_v19 }
 0x3ea   :  { %2093 = vmatprep.subr.mxu1 %v2931_v58  ;;  %2155 = vmatprep.subr.mxu0 %v2820_v21 }
 0x3eb   :  { %2094 = vmatpush3.msra.mxu1 %v2931_v58  ;;  %2156 = vmatpush3.msra.mxu0 %v2820_v21 }
 0x3ec   :  { %2095 = vmatprep.subr.mxu1 %v2939_v59  ;;  %2157 = vmatprep.subr.mxu0 %v2808_v16 }
 0x3ed   :  { %2096 = vmatpush3.msra.mxu1 %v2939_v59  ;;  %2158 = vmatpush3.msra.mxu0 %v2808_v16 }
 0x3ee   :  { %2097 = vmatprep.subr.mxu1 %v2947_v60  ;;  %2159 = vmatprep.subr.mxu0 %v2810_v17 }
 0x3ef   :  { %2098 = vmatpush3.msra.mxu1 %v2947_v60  ;;  %2160 = vmatpush3.msra.mxu0 %v2810_v17 }
 0x3f0   :  { %2099 = vmatprep.subr.mxu1 %v2955_v61  ;;  %2162 = vmatmul.mubr.f32.vlgmr.msra.gmra.mxu0 %v2808_v16 }
 0x3f1   :  { %2100 = vmatpush3.msra.mxu1 %v2955_v61  ;;  %2164 = vmatprep.mubr.f32.mxu0 %v2820_v21 }
 0x3f2   :  { %2101 = vmatprep.subr.mxu1 %v2963_v62 }
 0x3f3   :  { %2102 = vmatpush3.msra.mxu1 %v2963_v62 }
 0x3f4   :  { %2103 = vmatprep.subr.mxu1 %v2971_v63  ;;  %2165 = vmatmul.mubr.f32.gmra.mxu0 %v2816_v19 }
 0x3f5   :  { %2104 = vmatpush3.msra.mxu1 %v2971_v63  ;;  %2167 = vmatprep.mubr.f32.mxu0 %v2828_v25 }
 0x3f6   :  { %2106 = vmatmul.mubr.f32.vlgmr.msra.gmra.mxu1 %v2808_v16 }
 0x3f7   :  { %2108 = vmatprep.mubr.f32.mxu1 %v2820_v21 }
 0x3f8   :  { %2168 = vmatmul.mubr.f32.gmra.mxu0 %v2824_v23 }
 0x3f9   :  { %2170 = vmatprep.mubr.f32.mxu0 %v2836_v29 }
 0x3fa   :  { %2109 = vmatmul.mubr.f32.gmra.mxu1 %v2816_v19 }
 0x3fb   :  { %2111 = vmatprep.mubr.f32.mxu1 %v2828_v25 }
 0x3fc   :  { %2171 = vmatmul.mubr.f32.gmra.mxu0 %v2832_v27 }
 0x3fd   :  { %2173 = vmatprep.mubr.f32.mxu0 %v2842_v33 }
 0x3fe   :  { %2112 = vmatmul.mubr.f32.gmra.mxu1 %v2824_v23 }
 0x3ff   :  { %2114 = vmatprep.mubr.f32.mxu1 %v2836_v29 }
 0x400   :  { %2174 = vmatmul.mubr.f32.gmra.mxu0 %v2838_v31 }
 0x401   :  { %2176 = vmatprep.mubr.f32.mxu0 %v2846_v37 }
 0x402   :  { %2115 = vmatmul.mubr.f32.gmra.mxu1 %v2832_v27 }
 0x403   :  { %2117 = vmatprep.mubr.f32.mxu1 %v2842_v33 }
 0x404   :  { %2177 = vmatmul.mubr.f32.gmra.mxu0 %v2844_v35 }
 0x405   :  { %2179 = vmatprep.mubr.f32.mxu0 %v2850_v41 }
 0x406   :  { %2118 = vmatmul.mubr.f32.gmra.mxu1 %v2838_v31 }
 0x407   :  { %2120 = vmatprep.mubr.f32.mxu1 %v2846_v37 }
 0x408   :  { %2180 = vmatmul.mubr.f32.gmra.mxu0 %v2848_v39 }
 0x409   :  { %2182 = vmatprep.mubr.f32.mxu0 %v2855_v45 }
 0x40a   :  { %2121 = vmatmul.mubr.f32.gmra.mxu1 %v2844_v35 }
 0x40b   :  { %2123 = vmatprep.mubr.f32.mxu1 %v2850_v41 }
 0x40c   :  { %2183 = vmatmul.mubr.f32.gmra.mxu0 %v2852_v43 }
 0x40e   :  { %2124 = vmatmul.mubr.f32.gmra.mxu1 %v2848_v39 }
 0x40f   :  { %2126 = vmatprep.mubr.f32.mxu1 %v2855_v45 }
 0x412   :  { %2127 = vmatmul.mubr.f32.gmra.mxu1 %v2852_v43 }
 0x4b0   :  { %v3005_v0 = vpop.f32.mrf.mxu0 }
 0x4b2   :  { %v1120_v1 = vpop.f32.mrf.mxu0 }
 0x4b3   :  { %2217 = vmatprep.mubr.f32.mxu1 %v1120_v1 }
 0x4b4   :  { %v2166_v21 = vpop.f32.mrf.mxu0 }
 0x4b6   :  { %v2107_v2 = vpop.f32.mrf.mxu1  ;;  %v1130_v24 = vpop.f32.mrf.mxu0 }
 0x4b7   :  { %v1039_v38 = vadd.f32 %v2107_v2, %v2963_v62 }
 0x4b8   :  { %v3007_v3 = vpop.f32.mrf.mxu1  ;;  %v2169_v27 = vpop.f32.mrf.mxu0 }
 0x4b9   :  { %v1038_v39 = vadd.f32 %v3007_v3, %v2971_v63 }
 0x4ba   :  { %v2110_v4 = vpop.f32.mrf.mxu1  ;;  %v1140_v30 = vpop.f32.mrf.mxu0 }
 0x4bb   :  { %v1041_v35 = vadd.f32 %v2110_v4, %v2947_v60 }
 0x4bc   :  { %v969_v5 = vpop.f32.mrf.mxu1  ;;  %v2172_v33 = vpop.f32.mrf.mxu0 }
 0x4bd   :  { %v1040_v36 = vadd.f32 %v969_v5, %v2955_v61 }
 0x4be   :  { %v2113_v6 = vpop.f32.mrf.mxu1  ;;  %v1150_v37 = vpop.f32.mrf.mxu0 }
 0x4bf   :  { %v1043_v32 = vadd.f32 %v2113_v6, %v2931_v58 }
 0x4c0   :  { %v979_v7 = vpop.f32.mrf.mxu1  ;;  %v2175_v40 = vpop.f32.mrf.mxu0 }
 0x4c1   :  { %v1042_v34 = vadd.f32 %v979_v7, %v2939_v59 }
 0x4c2   :  { %v2116_v8 = vpop.f32.mrf.mxu1  ;;  %v1160_v41 = vpop.f32.mrf.mxu0 }
 0x4c3   :  { %v3048_v29 = vadd.f32 %v2116_v8, %v2915_v56 }
 0x4c4   :  { %v989_v9 = vpop.f32.mrf.mxu1  ;;  %v2178_v42 = vpop.f32.mrf.mxu0 }
 0x4c5   :  { %v3053_v31 = vadd.f32 %v989_v9, %v2923_v57 }
 0x4c6   :  { %v2119_v10 = vpop.f32.mrf.mxu1  ;;  %v1170_v43 = vpop.f32.mrf.mxu0 }
 0x4c7   :  { %v3038_v26 = vadd.f32 %v2119_v10, %v2901_v54 }
 0x4c8   :  { %v999_v11 = vpop.f32.mrf.mxu1  ;;  %v2181_v44 = vpop.f32.mrf.mxu0 }
 0x4c9   :  { %v3043_v28 = vadd.f32 %v999_v11, %v2908_v55 }
 0x4ca   :  { %v2122_v12 = vpop.f32.mrf.mxu1  ;;  %v1180_v45 = vpop.f32.mrf.mxu0 }
 0x4cb   :  { %v3028_v23 = vadd.f32 %v2122_v12, %v2887_v52 }
 0x4cc   :  { %v1009_v13 = vpop.f32.mrf.mxu1  ;;  %v2184_v46 = vpop.f32.mrf.mxu0 }
 0x4cd   :  { %v3033_v25 = vadd.f32 %v1009_v13, %v2894_v53 }
 0x4ce   :  { %v2125_v14 = vpop.f32.mrf.mxu1 }
 0x4cf   :  { %v3018_v20 = vadd.f32 %v2125_v14, %v2873_v50 }
 0x4d0   :  { %v1019_v15 = vpop.f32.mrf.mxu1 }
 0x4d1   :  { %v3023_v22 = vadd.f32 %v1019_v15, %v2880_v51 }
 0x4d2   :  { %v2128_v16 = vpop.f32.mrf.mxu1 }
 0x4d3   :  { %v3010_v17 = vadd.f32 %v2128_v16, %v2861_v47  ;;  %v1190_v47 = vpop.f32.mrf.mxu0 }
 0x4d4   :  { %v1029_v18 = vpop.f32.mrf.mxu1 }
 0x4d5   :  { %v3013_v19 = vadd.f32 %v1029_v18, %v2866_v49  ;;  %2185 = vmatprep.subr.mxu1 %v3010_v17 }
 0x4d6   :  { %2186 = vmatpush3.msra.mxu1 %v3010_v17 }
 0x4d7   :  { %2187 = vmatprep.subr.mxu1 %v3013_v19 }
 0x4d8   :  { %2188 = vmatpush3.msra.mxu1 %v3013_v19 }
 0x4d9   :  { %2189 = vmatprep.subr.mxu1 %v3018_v20 }
 0x4da   :  { %2190 = vmatpush3.msra.mxu1 %v3018_v20 }
 0x4db   :  { %2191 = vmatprep.subr.mxu1 %v3023_v22 }
 0x4dc   :  { %2192 = vmatpush3.msra.mxu1 %v3023_v22 }
 0x4dd   :  { %2193 = vmatprep.subr.mxu1 %v3028_v23 }
 0x4de   :  { %2194 = vmatpush3.msra.mxu1 %v3028_v23 }
 0x4df   :  { %2195 = vmatprep.subr.mxu1 %v3033_v25 }
 0x4e0   :  { %2196 = vmatpush3.msra.mxu1 %v3033_v25 }
 0x4e1   :  { %2197 = vmatprep.subr.mxu1 %v3038_v26 }
 0x4e2   :  { %2198 = vmatpush3.msra.mxu1 %v3038_v26 }
 0x4e3   :  { %2199 = vmatprep.subr.mxu1 %v3043_v28 }
 0x4e4   :  { %2200 = vmatpush3.msra.mxu1 %v3043_v28 }
 0x4e5   :  { %2201 = vmatprep.subr.mxu1 %v3048_v29 }
 0x4e6   :  { %2202 = vmatpush3.msra.mxu1 %v3048_v29 }
 0x4e7   :  { %2203 = vmatprep.subr.mxu1 %v3053_v31 }
 0x4e8   :  { %2204 = vmatpush3.msra.mxu1 %v3053_v31 }
 0x4e9   :  { %2205 = vmatprep.subr.mxu1 %v1043_v32 }
 0x4ea   :  { %2206 = vmatpush3.msra.mxu1 %v1043_v32 }
 0x4eb   :  { %2207 = vmatprep.subr.mxu1 %v1042_v34 }
 0x4ec   :  { %2208 = vmatpush3.msra.mxu1 %v1042_v34 }
 0x4ed   :  { %2209 = vmatprep.subr.mxu1 %v1041_v35 }
 0x4ee   :  { %2210 = vmatpush3.msra.mxu1 %v1041_v35 }
 0x4ef   :  { %2211 = vmatprep.subr.mxu1 %v1040_v36 }
 0x4f0   :  { %2212 = vmatpush3.msra.mxu1 %v1040_v36 }
 0x4f1   :  { %2213 = vmatprep.subr.mxu1 %v1039_v38 }
 0x4f2   :  { %2214 = vmatpush3.msra.mxu1 %v1039_v38 }
 0x4f3   :  { %2215 = vmatprep.subr.mxu1 %v1038_v39 }
 0x4f4   :  { %2216 = vmatpush3.msra.mxu1 %v1038_v39 }
 0x4f5   :  { %2218 = vmatmul.mubr.f32.vlgmr.msra.gmra.mxu1 %v3005_v0 }
 0x4f6   :  { %2220 = vmatprep.mubr.f32.mxu1 %v1130_v24 }
 0x4f9   :  { %2221 = vmatmul.mubr.f32.gmra.mxu1 %v2166_v21 }
 0x4fa   :  { %2223 = vmatprep.mubr.f32.mxu1 %v1140_v30 }
 0x4fd   :  { %2224 = vmatmul.mubr.f32.gmra.mxu1 %v2169_v27 }
 0x4fe   :  { %2226 = vmatprep.mubr.f32.mxu1 %v1150_v37 }
 0x501   :  { %2227 = vmatmul.mubr.f32.gmra.mxu1 %v2172_v33 }
 0x502   :  { %2229 = vmatprep.mubr.f32.mxu1 %v1160_v41 }
 0x505   :  { %2230 = vmatmul.mubr.f32.gmra.mxu1 %v2175_v40 }
 0x506   :  { %2232 = vmatprep.mubr.f32.mxu1 %v1170_v43 }
 0x509   :  { %2233 = vmatmul.mubr.f32.gmra.mxu1 %v2178_v42 }
 0x50a   :  { %2235 = vmatprep.mubr.f32.mxu1 %v1180_v45 }
 0x50d   :  { %2236 = vmatmul.mubr.f32.gmra.mxu1 %v2181_v44 }
 0x50e   :  { %2238 = vmatprep.mubr.f32.mxu1 %v1190_v47 }
 0x511   :  { %2239 = vmatmul.mubr.f32.gmra.mxu1 %v2184_v46 }
 0x5b5   :  { %v2219_v48 = vpop.f32.mrf.mxu1 }
 0x5b6   :  { %v1345_v50 = vadd.f32 %v2219_v48, %v1039_v38 }
 0x5b7   :  { %v1265_v49 = vpop.f32.mrf.mxu1 }
 0x5b8   :  { %v1344_v51 = vadd.f32 %v1265_v49, %v1038_v39 }
 0x5b9   :  { %v2222_v52 = vpop.f32.mrf.mxu1 }
 0x5ba   :  { %v1493_v53 = vpack.c.bf16 %v1345_v50, %v1344_v51  ;;  %v1347_v55 = vadd.f32 %v2222_v52, %v1041_v35 }
 0x5bb   :  { %v1275_v54 = vpop.f32.mrf.mxu1 }
 0x5bc   :  { %1494 = vst [vmem:[#allocation7] sm:$0xff] %v1493_v53   ;;  %v1346_v56 = vadd.f32 %v1275_v54, %v1040_v36 }
 0x5bd   :  { %v2225_v57 = vpop.f32.mrf.mxu1 }
 0x5be   :  { %v1498_v58 = vpack.c.bf16 %v1347_v55, %v1346_v56  ;;  %v1349_v60 = vadd.f32 %v2225_v57, %v1043_v32 }
 0x5bf   :  { %v1285_v59 = vpop.f32.mrf.mxu1 }
 0x5c0   :  { %1530 = vst [vmem:[#allocation7 + $0x8] sm:$0xff] %v1498_v58   ;;  %v1348_v61 = vadd.f32 %v1285_v59, %v1042_v34 }
 0x5c1   :  { %v2228_v62 = vpop.f32.mrf.mxu1 }
 0x5c2   :  { %v1503_v63 = vpack.c.bf16 %v1349_v60, %v1348_v61  ;;  %v1351_v1 = vadd.f32 %v2228_v62, %v3048_v29 }
 0x5c3   :  { %v1295_v0 = vpop.f32.mrf.mxu1 }
 0x5c4   :  { %1531 = vst [vmem:[#allocation7 + $0x10] sm:$0xff] %v1503_v63   ;;  %v1350_v2 = vadd.f32 %v1295_v0, %v3053_v31 }
 0x5c5   :  { %v2231_v3 = vpop.f32.mrf.mxu1 }
 0x5c6   :  { %v1508_v4 = vpack.c.bf16 %v1351_v1, %v1350_v2  ;;  %v1353_v6 = vadd.f32 %v2231_v3, %v3038_v26 }
 0x5c7   :  { %v1305_v5 = vpop.f32.mrf.mxu1 }
 0x5c8   :  { %1532 = vst [vmem:[#allocation7 + $0x18] sm:$0xff] %v1508_v4   ;;  %v1352_v7 = vadd.f32 %v1305_v5, %v3043_v28 }
 0x5c9   :  { %v2234_v8 = vpop.f32.mrf.mxu1 }
 0x5ca   :  { %v1513_v9 = vpack.c.bf16 %v1353_v6, %v1352_v7  ;;  %v1355_v11 = vadd.f32 %v2234_v8, %v3028_v23 }
 0x5cb   :  { %v1315_v10 = vpop.f32.mrf.mxu1 }
 0x5cc   :  { %1533 = vst [vmem:[#allocation7 + $0x20] sm:$0xff] %v1513_v9   ;;  %v1354_v12 = vadd.f32 %v1315_v10, %v3033_v25 }
 0x5cd   :  { %v2237_v13 = vpop.f32.mrf.mxu1 }
 0x5ce   :  { %v1518_v14 = vpack.c.bf16 %v1355_v11, %v1354_v12  ;;  %v1357_v16 = vadd.f32 %v2237_v13, %v3018_v20 }
 0x5cf   :  { %v1325_v15 = vpop.f32.mrf.mxu1 }
 0x5d0   :  { %1534 = vst [vmem:[#allocation7 + $0x28] sm:$0xff] %v1518_v14   ;;  %v1356_v18 = vadd.f32 %v1325_v15, %v3023_v22 }
 0x5d1   :  { %v2240_v21 = vpop.f32.mrf.mxu1 }
 0x5d2   :  { %v1523_v24 = vpack.c.bf16 %v1357_v16, %v1356_v18  ;;  %v1359_v27 = vadd.f32 %v2240_v21, %v3010_v17 }
 0x5d3   :  { %v1335_v26 = vpop.f32.mrf.mxu1 }
 0x5d4   :  { %1535 = vst [vmem:[#allocation7 + $0x30] sm:$0xff] %v1523_v24   ;;  %v1358_v23 = vadd.f32 %v1335_v26, %v3013_v19 }
 0x5d6   :  { %v1528_v25 = vpack.c.bf16 %v1359_v27, %v1358_v23 }
 0x5d8   :  { %1536 = vst [vmem:[#allocation7 + $0x38] sm:$0xff] %v1528_v25  }
 0x5d9   :  { %2299 = shalt.err (!%p2296_p0)
}
 0x5da   :  { %s2319_s22 = smov 64   ;;  %s2320_s23 = smov 4  }
 0x5db   :  { %1451 = dma.vmem_to_hbm [thread:$0]  %s1446_s1, 1024, %s3082_s2, [#allocation4], %s2319_s22, %s2319_s22, %s2320_s23  }
 0x5dc   :  { %2312 = dma.done.wait [#allocation4], 1024  }
 0x5dd   :  { %2313 = vsyncadd [#allocation4], 4294966272 }
 0x5de   :  { %1455 = vsyncpa [#allocation3], 1 }
 0x5df   :  { %1456 = vsyncpa [#allocation6], 1 }
 0x5e0   :  { %1457 = vsyncpa [#allocation4], 1 }

</bundles_post_ra>
